<compile_context>
chip_gen: v5e
topology: v5e:2x2
jax: 0.10.0
libtpu: 0.0.40
codegen_flags: <defaults>
</compile_context>

<pallas_src>
import functools
import math

import jax
import jax.numpy as jnp
from jax import lax
from jax.experimental import pallas as pl
from jax.experimental.pallas import tpu as pltpu


def _round_up(x, m):
    return (x + m - 1) // m * m


def _affine_kernel(scale, w_ref, wo_ref, b_ref, o_ref):
    # o = (w * scale) @ weight_orig^T + bias
    # Contraction done without materializing a transposed weight; MXU
    # accumulates in f32.
    w_scaled = w_ref[...] * scale                       # (bb, D) — smaller operand
    acc = lax.dot_general(
        w_scaled,
        wo_ref[...],                                    # (Np, D): contract dim 1 vs 1
        dimension_numbers=(((1,), (1,)), ((), ())),
        preferred_element_type=jnp.float32,
    )                                                   # (bb, Np) f32
    o_ref[...] = (acc + b_ref[...].astype(jnp.float32)).astype(o_ref.dtype)


def learned_affine_transform(w, weight_orig, bias, *, block_b=256):
    """
    w:           (B, dim_latent)             latent codes
    weight_orig: (2*n_channel, dim_latent)   un-scaled Linear weight (PyTorch layout)
    bias:        (2*n_channel,)              Linear bias
    returns:     (B, 2*n_channel, 1, 1)
    """
    B, dim_latent = w.shape
    dim_out = weight_orig.shape[0]
    scale = math.sqrt(2.0 / dim_latent)      # ScaleWeight: fan_in = dim_in for Linear

    # ---- TPU-friendly padding (no-ops when already aligned) -----------------
    d_pad = _round_up(dim_latent, 128)                  # lane dim of w / weight
    n_pad = _round_up(dim_out, 128)                     # lane-dense output / bias
    bb = min(_round_up(B, 8), _round_up(block_b, 8))    # sublane-aligned batch tile
    b_pad = _round_up(B, bb)

    if d_pad != dim_latent:
        w = jnp.pad(w, ((0, 0), (0, d_pad - dim_latent)))
        weight_orig = jnp.pad(weight_orig, ((0, 0), (0, d_pad - dim_latent)))
    if n_pad != dim_out:
        weight_orig = jnp.pad(weight_orig, ((0, n_pad - dim_out), (0, 0)))
        bias = jnp.pad(bias, ((0, n_pad - dim_out),))
    if b_pad != B:
        w = jnp.pad(w, ((0, b_pad - B), (0, 0)))

    bias2d = bias.reshape(1, n_pad)

    out = pl.pallas_call(
        functools.partial(_affine_kernel, scale),
        out_shape=jax.ShapeDtypeStruct((b_pad, n_pad), w.dtype),
        grid_spec=pltpu.PrefetchScalarGridSpec(
            num_scalar_prefetch=0,
            grid=(b_pad // bb,),
            in_specs=[
                pl.BlockSpec((bb, d_pad), lambda i: (i, 0)),     # latents: tiled over B
                pl.BlockSpec((n_pad, d_pad), lambda i: (0, 0)),  # weight: resident
                pl.BlockSpec((1, n_pad), lambda i: (0, 0)),      # bias: resident
            ],
            out_specs=pl.BlockSpec((bb, n_pad), lambda i: (i, 0)),
        ),
        compiler_params=pltpu.CompilerParams(
            # Batch tiles are independent -> both TensorCores on v7x.
            dimension_semantics=("parallel",),
        ),
    )(w, weight_orig, bias2d)

    out = out[:B, :dim_out]
    # PyTorch .unsqueeze(2).unsqueeze(3): (B, 2C) -> (B, 2C, 1, 1)
    return out.reshape(B, dim_out, 1, 1)


if __name__ == "__main__":
    # Small shapes consistent with the module's forward.
    batch = 2
    dim_latent = 32
    n_channel = 4
    dim_out = n_channel * 2

    key = jax.random.PRNGKey(0)
    k_w, k_weight = jax.random.split(key)

    # Latent input w: (B, dim_latent)
    w = jax.random.normal(k_w, (batch, dim_latent), dtype=jnp.float32)

    # Parameter init matching the module's __init__:
    #   linear.weight.data.normal_()  -> standard normal (kept as weight_orig)
    weight_orig = jax.random.normal(
        k_weight, (dim_out, dim_latent), dtype=jnp.float32
    )
    #   bias zeroed, then bias[:n_channel]=1, bias[n_channel:]=0
    bias = jnp.concatenate(
        [jnp.ones((n_channel,), jnp.float32), jnp.zeros((n_channel,), jnp.float32)]
    )

    style = learned_affine_transform(w, weight_orig, bias)
    style = jax.block_until_ready(style)

    # Reference check in plain JAX (same math, no Pallas).
    ref = (w @ (weight_orig.T * math.sqrt(2.0 / dim_latent)) + bias).reshape(
        batch, dim_out, 1, 1
    )
    assert style.shape == (batch, dim_out, 1, 1)
    assert jnp.allclose(style, ref, atol=1e-5, rtol=1e-5)

    print("KERNEL_OK")
</pallas_src>

<mosaic_0001>
module attributes {stable_mosaic.version = 11 : i64} {
  func.func @_affine_kernel(%arg0: i32, %arg1: memref<8x128xf32, #tpu.memory_space<vmem>>, %arg2: memref<128x128xf32, #tpu.memory_space<vmem>>, %arg3: memref<1x128xf32, #tpu.memory_space<vmem>>, %arg4: memref<8x128xf32, #tpu.memory_space<vmem>>) attributes {dimension_semantics = [#tpu.dimension_semantics<parallel>], iteration_bounds = array<i64: 1>, scalar_prefetch = 0 : i64, scratch_operands = 0 : i64, tpu.core_type = #tpu.core_type<tc>, window_params = [{transform_indices = @transform_0, window_bounds = array<i64: 8, 128>}, {pipeline_mode = #tpu.pipeline_mode<synchronous>, transform_indices = @transform_1, window_bounds = array<i64: 128, 128>}, {pipeline_mode = #tpu.pipeline_mode<synchronous>, transform_indices = @transform_2, window_bounds = array<i64: 1, 128>}, {transform_indices = @transform_3, window_bounds = array<i64: 8, 128>}]} {
    %c0 = arith.constant 0 : index
    %c0_0 = arith.constant 0 : index
    %0 = vector.load %arg1[%c0, %c0_0] : memref<8x128xf32, #tpu.memory_space<vmem>>, vector<8x128xf32>
    %cst = arith.constant 2.500000e-01 : f32
    %1 = vector.broadcast %cst : f32 to vector<8x128xf32>
    %2 = arith.mulf %0, %1 : vector<8x128xf32>
    %c0_1 = arith.constant 0 : index
    %c0_2 = arith.constant 0 : index
    %3 = vector.load %arg2[%c0_1, %c0_2] : memref<128x128xf32, #tpu.memory_space<vmem>>, vector<128x128xf32>
    %cst_3 = arith.constant dense<0.000000e+00> : vector<8x128xf32>
    %4 = tpu.matmul %2, %3, %cst_3 {dimension_numbers = #tpu.dot_dimension_numbers<[1], [1], [0], [0], [0, 0, 1, 0], [], []>} : vector<8x128xf32>, vector<128x128xf32>, vector<8x128xf32> -> vector<8x128xf32>
    %c0_4 = arith.constant 0 : index
    %c0_5 = arith.constant 0 : index
    %5 = vector.load %arg3[%c0_4, %c0_5] : memref<1x128xf32, #tpu.memory_space<vmem>>, vector<1x128xf32>
    %6 = vector.broadcast %5 : vector<1x128xf32> to vector<8x128xf32>
    %7 = arith.addf %4, %6 : vector<8x128xf32>
    %c0_6 = arith.constant 0 : index
    %c0_7 = arith.constant 0 : index
    %8 = vector.load %arg4[%c0_6, %c0_7] : memref<8x128xf32, #tpu.memory_space<vmem>>, vector<8x128xf32>
    tpu.vector_store %arg4[%c0_6, %c0_7], %7 {strides = array<i32>} : memref<8x128xf32, #tpu.memory_space<vmem>>, vector<8x128xf32>,
    return
  }
  func.func @transform_0(%arg0: i32) -> (i32, i32) {
    %c0_i32 = arith.constant 0 : i32
    %c0_i32_0 = arith.constant 0 : i32
    return %arg0, %c0_i32 : i32, i32
  }
  func.func @transform_1(%arg0: i32) -> (i32, i32) {
    %c0_i32 = arith.constant 0 : i32
    %c0_i32_0 = arith.constant 0 : i32
    %c0_i32_1 = arith.constant 0 : i32
    return %c0_i32, %c0_i32_0 : i32, i32
  }
  func.func @transform_2(%arg0: i32) -> (i32, i32) {
    %c0_i32 = arith.constant 0 : i32
    %c0_i32_0 = arith.constant 0 : i32
    %c0_i32_1 = arith.constant 0 : i32
    return %c0_i32, %c0_i32_0 : i32, i32
  }
  func.func @transform_3(%arg0: i32) -> (i32, i32) {
    %c0_i32 = arith.constant 0 : i32
    %c0_i32_0 = arith.constant 0 : i32
    return %arg0, %c0_i32 : i32, i32
  }
}

</mosaic_0001>

<bundles_post_ra>
// kernel: tpu_custom_call.1
= control target key start
LH: loop header
LB: loop body
LE: loop exit
PB: predicated region body
PF: predicated region fallthrough
CT: control target
= control target key end

     0   :  { %8 = vsyncpa [#allocation3], 0  ;;  %s227_s0 = inlined_call_operand.hbm [shape: f32[8,128], index: 0, kind: input, shape index: {}]   ;;  %s228_s1 = inlined_call_operand.hbm [shape: f32[128,128], index: 1, kind: input, shape index: {}]   ;;  %s229_s2 = inlined_call_operand.vmem [shape: f32[1,128], index: 2, kind: input, shape index: {}]   ;;  %s230_s3 = inlined_call_operand.hbm [shape: f32[8,128], index: 3, kind: output, shape index: {}]  }
   0x1   :  { %9 = vsyncpa [#allocation6], 0 }
   0x2   :  { %10 = vsyncpa [#allocation4], 0  ;;  %s16_s14 = sshll.u32 %s227_s0, 4  ;;  %s190_s15 = smov [#allocation2]   ;;  %s17_s14 = int_to_ptr.hbm [resolvable:$true] %s16_s14 }
   0x3   :  { %s18_s16 = sshll.u32 %s190_s15, 4  ;;  %s26_s19 = sshll.u32 %s228_s1, 4  ;;  %s19_s16 = int_to_ptr.vmem [resolvable:$true] %s18_s16  ;;  %s27_s19 = int_to_ptr.hbm [resolvable:$true] %s26_s19 }
   0x4   :  { %21 = dma.hbm_to_vmem [thread:$0]  %s17_s14, 128, %s19_s16, [#allocation3]  }
   0x5   :  { %s191_s20 = smov [#allocation5]   ;;  %s192_s22 = smov 128  }
   0x6   :  { %s28_s21 = sshll.u32 %s191_s20, 4  ;;  %s193_s23 = smov 8   ;;  %s29_s21 = int_to_ptr.vmem [resolvable:$true] %s28_s21 }
   0x7   :  { %34 = dma.hbm_to_vmem [thread:$0]  %s27_s19, 2048, %s29_s21, [#allocation6], %s192_s22, %s192_s22, %s193_s23  }
   0x8   :  { %184 = dma.done.wait [#allocation3], 128  }
   0x9   :  { %185 = vsyncadd [#allocation3], 4294967168 }
   0xa   :  { %186 = dma.done.wait [#allocation6], 2048  }
   0xb   :  { %187 = vsyncadd [#allocation6], 4294965248  ;;  %v62_v0 = vld [vmem:[#allocation5 + $0x78] sm:$0xff]  ;;  %v61_v1 = vld [vmem:[#allocation5 + $0x70] sm:$0xff]  ;;  %s194_s24 = smov [#allocation7]   ;;  %s95_s28 = sshll.u32 %s230_s3, 4  ;;  %s96_s28 = int_to_ptr.hbm [resolvable:$true] %s95_s28 }
   0xc   :  { %67 = vmatpush.xpose.msra.mxu0 %v62_v0  ;;  %v60_v2 = vld [vmem:[#allocation5 + $0x68] sm:$0xff]  ;;  %v59_v3 = vld [vmem:[#allocation5 + $0x60] sm:$0xff]  ;;  %v58_v4 = vld [vmem:[#allocation5 + $0x58] sm:$0xff]  ;;  %s93_s25 = sshll.u32 %s194_s24, 4  ;;  %s94_s25 = int_to_ptr.vmem [resolvable:$true] %s93_s25 }
   0xd   :  { %v57_v5 = vld [vmem:[#allocation5 + $0x50] sm:$0xff]  ;;  %v56_v6 = vld [vmem:[#allocation5 + $0x48] sm:$0xff]  ;;  %v55_v7 = vld [vmem:[#allocation5 + $0x40] sm:$0xff] }
   0xe   :  { %v54_v8 = vld [vmem:[#allocation5 + $0x38] sm:$0xff]  ;;  %v53_v9 = vld [vmem:[#allocation5 + $0x30] sm:$0xff]  ;;  %v52_v10 = vld [vmem:[#allocation5 + $0x28] sm:$0xff] }
   0xf   :  { %v51_v11 = vld [vmem:[#allocation5 + $0x20] sm:$0xff]  ;;  %v50_v12 = vld [vmem:[#allocation5 + $0x18] sm:$0xff]  ;;  %v49_v13 = vld [vmem:[#allocation5 + $0x10] sm:$0xff] }
  0x10   :  { %68 = vmatpush.xpose.msra.mxu0 %v61_v1  ;;  %v48_v14 = vld [vmem:[#allocation5 + $0x8] sm:$0xff]  ;;  %v45_v15 = vld [vmem:[#allocation2] sm:$0xff]  ;;  %v47_v16 = vld [vmem:[#allocation5] sm:$0xff] }
  0x11   :  { %v46_v17 = vmul.f32 0.25, %v45_v15  ;;  %v111_v18 = vld [vmem:[%s229_s2] ss:$0 sm:$0xff] }
  0x14   :  { %69 = vmatpush.xpose.msra.mxu0 %v60_v2 }
  0x18   :  { %70 = vmatpush.xpose.msra.mxu0 %v59_v3 }
  0x1c   :  { %71 = vmatpush.xpose.msra.mxu0 %v58_v4 }
  0x20   :  { %72 = vmatpush.xpose.msra.mxu0 %v57_v5 }
  0x24   :  { %73 = vmatpush.xpose.msra.mxu0 %v56_v6 }
  0x28   :  { %74 = vmatpush.xpose.msra.mxu0 %v55_v7 }
  0x2c   :  { %75 = vmatpush.xpose.msra.mxu0 %v54_v8 }
  0x30   :  { %76 = vmatpush.xpose.msra.mxu0 %v53_v9 }
  0x34   :  { %77 = vmatpush.xpose.msra.mxu0 %v52_v10 }
  0x38   :  { %78 = vmatpush.xpose.msra.mxu0 %v51_v11 }
  0x3c   :  { %79 = vmatpush.xpose.msra.mxu0 %v50_v12 }
  0x40   :  { %80 = vmatpush.xpose.msra.mxu0 %v49_v13 }
  0x44   :  { %81 = vmatpush.xpose.msra.mxu0 %v48_v14 }
  0x48   :  { %82 = vmatpush.xpose.msra.mxu0 %v47_v16 }
  0x4b   :  { %83 = vmatmul.f32.vlgmr.msra.gmra.mxu0 %v46_v17 }
  0xc8   :  { %v84_v19 = vpop.f32.mrf.mxu0 }
  0xc9   :  { %v85_v20 = vadd.f32 %v111_v18, %v84_v19 }
  0xcb   :  { %87 = vst [vmem:[#allocation7] sm:$0xff] %v85_v20 }
  0xcc   :  { %98 = dma.vmem_to_hbm [thread:$0]  %s94_s25, 128, %s96_s28, [#allocation4]  }
  0xcd   :  { %188 = dma.done.wait [#allocation4], 128  }
  0xce   :  { %189 = vsyncadd [#allocation4], 4294967168 }
  0xcf   :  { %103 = vsyncpa [#allocation3], 1 }
  0xd0   :  { %104 = vsyncpa [#allocation6], 1 }
  0xd1   :  { %105 = vsyncpa [#allocation4], 1 }

</bundles_post_ra>
